<compile_context>
chip_gen: v7x
topology: tpu7x:2x2x1
jax: 0.10.0
libtpu: 0.0.40
codegen_flags: <defaults>
</compile_context>

<pallas_src>
import functools

import jax
import jax.numpy as jnp
from jax import lax
from jax.experimental import pallas as pl
from jax.experimental.pallas import tpu as pltpu

_LANE_CANDIDATES = (2048, 1024, 512, 256, 128)
_MIB = 1024 * 1024


@functools.lru_cache(maxsize=1)
def _device_budget():
    """Generation-aware VMEM limit + block-size targets (in f32 bytes/block)."""
    vmem_cap = None
    try:
        vmem_cap = int(pltpu.get_tpu_info().vmem_capacity_bytes)
    except Exception:  # unknown environment -> conservative budget
        vmem_cap = None
    if vmem_cap is not None and vmem_cap >= 100 * _MIB:
        # v5e / v6e: 128 MiB VMEM per TensorCore.
        return {
            "vmem_limit": 64 * _MIB,
            "pass1_f32": 10 * _MIB,
            "pass2_f32": 6 * _MIB,
            "small_f32": 8 * _MIB,
        }
    # v7x (64 MiB VMEM/TC) or unknown: safe on every generation.
    return {
        "vmem_limit": 48 * _MIB,
        "pass1_f32": 8 * _MIB,
        "pass2_f32": 5 * _MIB,
        "small_f32": 6 * _MIB,
    }


def _pick_row_block(rows, cols, target_f32_bytes, sub):
    """Largest row block <= target (f32 bytes), multiple of the sublane unit."""
    per_row = cols * 4
    rb_target = max(sub, (target_f32_bytes // per_row) // sub * sub)
    rb_rows = max(sub, (rows // sub) * sub)
    return min(rb_target, rb_rows)


# ---------------------------------------------------------------------------
# Kernels
# ---------------------------------------------------------------------------
def _wrelu_small_kernel(x_ref, o_ref):
    """Whole slab resident in VMEM: global reduce + elementwise in one pass."""
    x = x_ref[...].astype(jnp.float32)
    s = jnp.sum(jnp.abs(x))
    inv_s = 1.0 / s
    y = x * (1.0 + x * inv_s)           # for x > 0, |x| == x
    o_ref[...] = jnp.where(x > 0.0, y, 0.0).astype(o_ref.dtype)


def _sum_abs_kernel(x_ref, p_ref, *, rows, row_block, mask_tail):
    """Per-block partial sums of |x| reduced to a single (8, 128) f32 tile."""
    ax = jnp.abs(x_ref[...].astype(jnp.float32))
    if mask_tail:
        i = pl.program_id(0)
        row_ids = i * row_block + lax.broadcasted_iota(
            jnp.int32, (row_block, 1), 0
        )
        ax = jnp.where(row_ids < rows, ax, 0.0)
    cols = ax.shape[1]
    # (row_block, cols) -> (row_block//8, 8, cols): pure major-dim split, then
    # a VALU-only reduction that keeps the native (8, lanes) layout.
    r = jnp.sum(ax.reshape(row_block // 8, 8, cols), axis=0)      # (8, cols)
    # Lane reduction to (8, 128): static 128-aligned slices == vreg adds.
    acc = r[:, 0:128]
    for c in range(1, cols // 128):
        acc = acc + r[:, c * 128:(c + 1) * 128]
    p_ref[...] = acc


def _wrelu_elementwise_kernel(inv_s_ref, x_ref, o_ref):
    """Elementwise WReLU with the precomputed 1/sum(|x|) scalar from SMEM."""
    inv_s = inv_s_ref[0]
    x = x_ref[...].astype(jnp.float32)
    y = x * (1.0 + x * inv_s)           # for x > 0, |x| == x
    o_ref[...] = jnp.where(x > 0.0, y, 0.0).astype(o_ref.dtype)


# ---------------------------------------------------------------------------
# Wrapper
# ---------------------------------------------------------------------------
def _wrelu_jnp(xf):
    """Plain-jnp fallback for tensors with fewer than 128 elements."""
    x32 = xf.astype(jnp.float32)
    s = jnp.sum(jnp.abs(x32))
    y = jnp.where(x32 > 0.0, x32 * (1.0 + x32 * (1.0 / s)), 0.0)
    return y.astype(xf.dtype)


def wrelu(x):
    """WReLU forward. x: any-rank float array (e.g. NCHW). Same shape/dtype out."""
    orig_shape = x.shape
    dtype = x.dtype
    n = int(x.size)
    if n == 0:
        return x

    budget = _device_budget()
    vmem_limit = budget["vmem_limit"]

    xf = x.reshape(-1)

    # Split off the (<128)-element tail: the bulk needs no pad copy and the
    # output needs no trailing slice copy.
    m = (n // 128) * 128
    if m == 0:
        # Tiny tensor: not worth a kernel launch.
        return _wrelu_jnp(xf).reshape(orig_shape)
    has_tail = m != n
    prefix = xf[:m] if has_tail else xf
    tail = xf[m:] if has_tail else None

    # Widest lane-dense slab width dividing the prefix (m is a multiple of 128).
    cols = 128
    for c in _LANE_CANDIDATES:
        if m % c == 0:
            cols = c
            break
    rows = m // cols
    x2d = prefix.reshape(rows, cols)

    itemsize = jnp.dtype(dtype).itemsize
    f32_bytes = rows * cols * 4   # f32 footprint of the slab

    if (not has_tail) and f32_bytes <= budget["small_f32"]:
        # ---- Single-pass path: whole slab resident in VMEM (2 HBM passes). ----
        out2d = pl.pallas_call(
            _wrelu_small_kernel,
            out_shape=jax.ShapeDtypeStruct((rows, cols), dtype),
            compiler_params=pltpu.CompilerParams(vmem_limit_bytes=vmem_limit),
        )(x2d)
        return out2d.reshape(orig_shape)

    # ---- Two-pass streaming path with generation-tuned, decoupled blocks. ----
    sub = max(8, 32 // itemsize)          # dtype-native sublane multiple
    rb1 = _pick_row_block(rows, cols, budget["pass1_f32"], sub)
    rb2 = _pick_row_block(rows, cols, budget["pass2_f32"], sub)
    nb1 = pl.cdiv(rows, rb1)
    nb2 = pl.cdiv(rows, rb2)
    mask_tail = (rows % rb1) != 0

    # Pass 1: parallel per-block partial sums of |x|; (8, 128) tile per block.
    partials = pl.pallas_call(
        functools.partial(
            _sum_abs_kernel, rows=rows, row_block=rb1, mask_tail=mask_tail
        ),
        out_shape=jax.ShapeDtypeStruct((nb1 * 8, 128), jnp.float32),
        grid_spec=pltpu.PrefetchScalarGridSpec(
            num_scalar_prefetch=0,
            grid=(nb1,),
            in_specs=[pl.BlockSpec((rb1, cols), lambda i: (i, 0))],
            out_specs=pl.BlockSpec((8, 128), lambda i: (i, 0)),
        ),
        compiler_params=pltpu.CompilerParams(
            dimension_semantics=("parallel",),
            vmem_limit_bytes=vmem_limit,
        ),
    )(x2d)

    s = jnp.sum(partials)
    if has_tail:
        tail_f32 = tail.astype(jnp.float32)
        s = s + jnp.sum(jnp.abs(tail_f32))
    # If sum(|x|) == 0 then inv_s = inf and the unselected branch is NaN, but
    # jnp.where still yields 0 because no element satisfies x > 0.
    inv_scalar = 1.0 / s
    inv_s = jnp.reshape(inv_scalar, (1,)).astype(jnp.float32)

    # Pass 2: elementwise WReLU; inv_s rides the scalar path in SMEM.
    # (Kept as an SMEM BlockSpec input rather than num_scalar_prefetch=1 —
    #  functionally identical, already validated plumbing.)
    out2d = pl.pallas_call(
        _wrelu_elementwise_kernel,
        out_shape=jax.ShapeDtypeStruct((rows, cols), dtype),
        grid_spec=pltpu.PrefetchScalarGridSpec(
            num_scalar_prefetch=0,
            grid=(nb2,),
            in_specs=[
                pl.BlockSpec(memory_space=pltpu.MemorySpace.SMEM),
                pl.BlockSpec((rb2, cols), lambda i: (i, 0)),
            ],
            out_specs=pl.BlockSpec((rb2, cols), lambda i: (i, 0)),
        ),
        compiler_params=pltpu.CompilerParams(
            dimension_semantics=("parallel",),
            vmem_limit_bytes=vmem_limit,
        ),
    )(inv_s, x2d)

    if has_tail:
        tail_out = jnp.where(
            tail_f32 > 0.0, tail_f32 * (1.0 + tail_f32 * inv_scalar), 0.0
        ).astype(dtype)
        return jnp.concatenate([out2d.reshape(-1), tail_out]).reshape(orig_shape)
    return out2d.reshape(orig_shape)


def wrelu_ref(x):
    """Pure-JAX reference (math in f32, cast back to input dtype)."""
    x32 = x.astype(jnp.float32)
    ax = jnp.abs(x32)
    s = jnp.sum(ax)
    y = jnp.where(x32 > 0.0, x32 + ax / s * x32, 0.0)
    return y.astype(x.dtype)


if __name__ == "__main__":
    key = jax.random.PRNGKey(0)
    cases = [
        ((2, 4, 16, 16), jnp.float32),     # primary NCHW shape: single-pass path
        ((2, 3, 5, 7), jnp.float32),       # numel % 128 != 0: prefix kernel + jnp tail
        ((10, 63, 64, 64), jnp.float32),   # streaming 2-pass path, masked tail blocks
        ((10, 63, 64, 64), jnp.bfloat16),  # bf16 streaming path (16-row sublane blocks)
    ]
    for i, (shp, dt) in enumerate(cases):
        k = jax.random.fold_in(key, i)
        x = jax.random.normal(k, shp, dtype=jnp.float32).astype(dt)
        out = jax.block_until_ready(wrelu(x))
        ref = wrelu_ref(x)
        assert out.shape == x.shape and out.dtype == x.dtype
        if dt == jnp.bfloat16:
            ok = jnp.allclose(out.astype(jnp.float32), ref.astype(jnp.float32),
                              atol=2e-2, rtol=2e-2)
        else:
            ok = jnp.allclose(out, ref, atol=1e-5, rtol=1e-5)
        assert ok, f"mismatch at {shp} {dt}"

    # Degenerate input: sum(|x|) == 0 must still produce exact zeros (no NaN).
    z = jnp.zeros((2, 4, 16, 16), jnp.float32)
    outz = jax.block_until_ready(wrelu(z))
    assert bool(jnp.all(outz == 0.0))

    print("KERNEL_OK")
</pallas_src>

<mosaic_0001>
module attributes {stable_mosaic.version = 11 : i64} {
  func.func @_wrelu_small_kernel(%arg0: memref<1x2048xf32, #tpu.memory_space<vmem>>, %arg1: memref<1x2048xf32, #tpu.memory_space<vmem>>) attributes {dimension_semantics = [], scalar_prefetch = 0 : i64, scratch_operands = 0 : i64, tpu.core_type = #tpu.core_type<tc>} {
    %c0 = arith.constant 0 : index
    %c0_0 = arith.constant 0 : index
    %0 = vector.load %arg0[%c0, %c0_0] : memref<1x2048xf32, #tpu.memory_space<vmem>>, vector<1x2048xf32>
    %1 = math.absf %0 : vector<1x2048xf32>
    %2 = vector.shape_cast %1 : vector<1x2048xf32> to vector<1x1x2048xf32>
    %cst = arith.constant dense<0.000000e+00> : vector<1xf32>
    %3 = vector.multi_reduction <add>, %2, %cst [1, 2] : vector<1x1x2048xf32> to vector<1xf32>
    %4 = vector.shape_cast %3 : vector<1xf32> to vector<1x1x1xf32>
    %5 = vector.extract %4[0, 0, 0] : f32 from vector<1x1x1xf32>
    %cst_1 = arith.constant 1.000000e+00 : f32
    %6 = arith.divf %cst_1, %5 : f32
    %7 = vector.broadcast %6 : f32 to vector<1x2048xf32>
    %8 = arith.mulf %0, %7 : vector<1x2048xf32>
    %cst_2 = arith.constant 1.000000e+00 : f32
    %9 = vector.broadcast %cst_2 : f32 to vector<1x2048xf32>
    %10 = arith.addf %9, %8 : vector<1x2048xf32>
    %11 = arith.mulf %0, %10 : vector<1x2048xf32>
    %cst_3 = arith.constant 0.000000e+00 : f32
    %12 = vector.broadcast %cst_3 : f32 to vector<1x2048xf32>
    %13 = arith.cmpf ogt, %0, %12 : vector<1x2048xf32>
    %cst_4 = arith.constant 0.000000e+00 : f32
    %14 = vector.broadcast %cst_4 : f32 to vector<1x2048xf32>
    %15 = arith.select %13, %11, %14 : vector<1x2048xi1>, vector<1x2048xf32>
    %c0_5 = arith.constant 0 : index
    %c0_6 = arith.constant 0 : index
    %16 = vector.load %arg1[%c0_5, %c0_6] : memref<1x2048xf32, #tpu.memory_space<vmem>>, vector<1x2048xf32>
    tpu.vector_store %arg1[%c0_5, %c0_6], %15 {strides = array<i32>} : memref<1x2048xf32, #tpu.memory_space<vmem>>, vector<1x2048xf32>,
    return
  }
}

</mosaic_0001>

<bundles_post_ra>
// kernel: tpu_custom_call.1
= control target key start
LH: loop header
LB: loop body
LE: loop exit
PB: predicated region body
PF: predicated region fallthrough
CT: control target
= control target key end

     0   :  { %6 = vsyncpa [#allocation3], 0  ;;  %s299_s0 = inlined_call_operand.hbm [shape: f32[1,2048], index: 0, kind: input, shape index: {}]   ;;  %s300_s1 = inlined_call_operand.hbm [shape: f32[1,2048], index: 1, kind: output, shape index: {}]  }
   0x1   :  { %7 = vsyncpa [#allocation4], 0  ;;  %s235_s6 = smov [#allocation2]   ;;  %s187_s10 = scalar_lea.hbm %s299_s0, 256 }
   0x2   :  { %s14_s7 = sshll.u32 %s235_s6, 4  ;;  %p188_p0 = scmp.ne.s32.totalorder %s299_s0, %s187_s10  ;;  %s15_s7 = int_to_ptr.vmem [resolvable:$true] %s14_s7 }
   0x3   :  { %p191_p1 = scmp.lt.u32.totalorder %s187_s10, %s299_s0 }
   0x5   :  { %p193_p2 = pnand %p191_p1, %p188_p0 }
   0x7   :  { %196 = shalt.err (!%p193_p2)
}
   0x8   :  { %s197_s15 = scalar_lea.vmem %s15_s7, 256  ;;  %p202_p4 = scmp.lt.s32.totalorder %s15_s7, %s15_s7 }
   0x9   :  { %p198_p3 = scmp.ne.s32.totalorder %s15_s7, %s197_s15  ;;  %p203_p5 = scmp.lt.s32.totalorder %s197_s15, %s197_s15 }
   0xb   :  { %p204_p6 = por %p203_p5, %p202_p4 }
   0xd   :  { %p205_p7 = pnand %p204_p6, %p198_p3 }
   0xf   :  { %208 = shalt.err (!%p205_p7)
}
  0x10   :  { %17 = dma.hbm_to_vmem [thread:$0]  %s299_s0, 256, %s15_s7, [#allocation3]  }
  0x11   :  { %231 = dma.done.wait [#allocation3], 256  }
  0x12   :  { %232 = vsyncadd [#allocation3], 4294967040  ;;  %v27_v0 = vlaneseq  ;;  %v259_v5 = vld [vmem:[#allocation2] sm:$0xff]  ;;  %vm107_vm0 = vcmask 1040384   ;;  %v265_v19 = vld [vmem:[#allocation2 + $0x8] sm:$0xff]  ;;  %s236_s19 = smov [#allocation5]  }
  0x13   :  { %v23_v6 = vand.u32 2147483647, %v259_v5  ;;  %v24_v25 = vand.u32 2147483647, %v265_v19  ;;  %s170_s20 = sshll.u32 %s236_s19, 4  ;;  %vm158_vm1 = vcmp.gt.f32.partialorder %v259_v5, 0.0  ;;  %s171_s20 = int_to_ptr.vmem [resolvable:$true] %s170_s20 }
  0x14   :  { %v28_v1 = vshrl.u32 %v27_v0, 7  ;;  %vm159_vm2 = vcmp.gt.f32.partialorder %v265_v19, 0.0  ;;  %s209_s21 = scalar_lea.vmem %s171_s20, 256  ;;  %p214_p9 = scmp.lt.s32.totalorder %s171_s20, %s171_s20 }
  0x15   :  { %p210_p8 = scmp.ne.s32.totalorder %s171_s20, %s209_s21  ;;  %p215_p10 = scmp.lt.s32.totalorder %s209_s21, %s209_s21 }
  0x16   :  { %v29_v2 = vsub.s32 0, %v28_v1  ;;  %v33_v3 = vsub.s32 1, %v28_v1  ;;  %v37_v4 = vsub.s32 2, %v28_v1  ;;  %v41_v7 = vsub.s32 3, %v28_v1 }
  0x17   :  { %v45_v11 = vsub.s32 4, %v28_v1  ;;  %v49_v13 = vsub.s32 5, %v28_v1  ;;  %v53_v14 = vsub.s32 6, %v28_v1  ;;  %v57_v22 = vsub.s32 7, %v28_v1  ;;  %p216_p11 = por %p215_p10, %p214_p9 }
  0x18   :  { %v30_v8 = vrot.slane %v23_v6, %v29_v2  ;;  %v34_v9 = vrot.slane %v23_v6, %v33_v3  ;;  %v38_v10 = vrot.slane %v23_v6, %v37_v4  ;;  %v42_v12 = vrot.slane %v23_v6, %v41_v7 }
  0x19   :  { %v46_v15 = vrot.slane %v23_v6, %v45_v11  ;;  %v50_v21 = vrot.slane %v23_v6, %v49_v13  ;;  %v54_v26 = vrot.slane %v23_v6, %v53_v14  ;;  %v58_v29 = vrot.slane %v23_v6, %v57_v22  ;;  %p217_p12 = pnand %p216_p11, %p210_p8 }
  0x1a   :  { %v108_v16 = vsel %vm107_vm0, %v30_v8, 0.0  ;;  %v109_v17 = vsel %vm107_vm0, %v34_v9, 0.0  ;;  %v111_v18 = vsel %vm107_vm0, %v38_v10, 0.0  ;;  %v113_v23 = vsel %vm107_vm0, %v42_v12, 0.0 }
  0x1b   :  { %v110_v20 = vadd.f32 %v109_v17, %v108_v16  ;;  %v115_v27 = vsel %vm107_vm0, %v46_v15, 0.0  ;;  %v117_v30 = vsel %vm107_vm0, %v50_v21, 0.0  ;;  %v62_v32 = vrot.slane %v24_v25, %v29_v2 }
  0x1c   :  { %v119_v33 = vsel %vm107_vm0, %v54_v26, 0.0  ;;  %v66_v35 = vrot.slane %v24_v25, %v33_v3  ;;  %v121_v36 = vsel %vm107_vm0, %v58_v29, 0.0  ;;  %v70_v38 = vrot.slane %v24_v25, %v37_v4 }
  0x1d   :  { %v112_v24 = vadd.f32 %v111_v18, %v110_v20  ;;  %v123_v39 = vsel %vm107_vm0, %v62_v32, 0.0  ;;  %v74_v41 = vrot.slane %v24_v25, %v41_v7  ;;  %v78_v44 = vrot.slane %v24_v25, %v45_v11 }
  0x1e   :  { %v125_v42 = vsel %vm107_vm0, %v66_v35, 0.0  ;;  %v127_v45 = vsel %vm107_vm0, %v70_v38, 0.0  ;;  %v82_v47 = vrot.slane %v24_v25, %v49_v13  ;;  %v86_v50 = vrot.slane %v24_v25, %v53_v14 }
  0x1f   :  { %v114_v28 = vadd.f32 %v113_v23, %v112_v24  ;;  %v129_v48 = vsel %vm107_vm0, %v74_v41, 0.0  ;;  %v131_v51 = vsel %vm107_vm0, %v78_v44, 0.0  ;;  %v90_v53 = vrot.slane %v24_v25, %v57_v22 }
  0x20   :  { %v133_v54 = vsel %vm107_vm0, %v82_v47, 0.0  ;;  %v135_v56 = vsel %vm107_vm0, %v86_v50, 0.0 }
  0x21   :  { %v116_v31 = vadd.f32 %v115_v27, %v114_v28  ;;  %v137_v58 = vsel %vm107_vm0, %v90_v53, 0.0 }
  0x23   :  { %v118_v34 = vadd.f32 %v117_v30, %v116_v31 }
  0x25   :  { %v120_v37 = vadd.f32 %v119_v33, %v118_v34 }
  0x27   :  { %v122_v40 = vadd.f32 %v121_v36, %v120_v37 }
  0x29   :  { %v124_v43 = vadd.f32 %v123_v39, %v122_v40 }
  0x2b   :  { %v126_v46 = vadd.f32 %v125_v42, %v124_v43 }
  0x2d   :  { %v128_v49 = vadd.f32 %v127_v45, %v126_v46 }
  0x2f   :  { %v130_v52 = vadd.f32 %v129_v48, %v128_v49 }
  0x31   :  { %v132_v55 = vadd.f32 %v131_v51, %v130_v52 }
  0x33   :  { %v134_v57 = vadd.f32 %v133_v54, %v132_v55 }
  0x35   :  { %v136_v59 = vadd.f32 %v135_v56, %v134_v57 }
  0x37   :  { %v138_v60 = vadd.f32 %v137_v58, %v136_v59 }
  0x39   :  { %139 = vadd.xlane.f32.xlu0 %v138_v60 }
  0xc6   :  { %v140_v61 = vpop.xlane.xlu0 %139 }
  0xc7   :  { %v141_v62 = vrot.slane %v140_v61, 4 }
  0xc9   :  { %v142_v63 = vadd.f32 %v141_v62, %v140_v61 }
  0xcb   :  { %v143_v0 = vrot.slane %v142_v63, 2 }
  0xcd   :  { %v144_v1 = vadd.f32 %v143_v0, %v142_v63 }
  0xcf   :  { %v145_v2 = vrot.slane %v144_v1, 1 }
  0xd1   :  { %v146_v3 = vadd.f32 %v145_v2, %v144_v1 }
  0xd3   :  { %179 = vpush %v146_v3 }
 0x104   :  { %s180_s0 = spop %179 }
 0x105   :  { %v148_v4 = vstv %s180_s0 }
 0x106   :  { %185 = vrcp.f32 %v148_v4 }
 0x110   :  { %v186_v6 = vpop.eup %185 }
 0x111   :  { %181 = vpush %v186_v6 }
 0x142   :  { %s182_s18 = spop %181 }
 0x143   :  { %v151_v7 = vstv %s182_s18 }
 0x144   :  { %v152_v8 = vmul.f32 %v151_v7, %v259_v5  ;;  %v153_v9 = vmul.f32 %v151_v7, %v265_v19 }
 0x146   :  { %v154_v10 = vadd.f32 1.0, %v152_v8  ;;  %v155_v11 = vadd.f32 1.0, %v153_v9 }
 0x148   :  { %v156_v12 = vmul.f32 %v154_v10, %v259_v5  ;;  %v157_v13 = vmul.f32 %v155_v11, %v265_v19 }
 0x14a   :  { %v160_v14 = vsel %vm158_vm1, %v156_v12, 0.0  ;;  %v161_v15 = vsel %vm159_vm2, %v157_v13, 0.0 }
 0x14b   :  { %162 = vst [vmem:[#allocation5] sm:$0xff] %v160_v14  ;;  %163 = vst [vmem:[#allocation5 + $0x8] sm:$0xff] %v161_v15 }
 0x14c   :  { %220 = shalt.err (!%p217_p12)
}
 0x14d   :  { %s221_s24 = scalar_lea.hbm %s300_s1, 256 }
 0x14e   :  { %p222_p13 = scmp.ne.s32.totalorder %s300_s1, %s221_s24  ;;  %p225_p0 = scmp.lt.u32.totalorder %s221_s24, %s300_s1 }
 0x150   :  { %p227_p1 = pnand %p225_p0, %p222_p13 }
 0x152   :  { %230 = shalt.err (!%p227_p1)
}
 0x153   :  { %173 = dma.vmem_to_hbm [thread:$0]  %s171_s20, 256, %s300_s1, [#allocation4]  }
 0x154   :  { %233 = dma.done.wait [#allocation4], 256  }
 0x155   :  { %234 = vsyncadd [#allocation4], 4294967040 }
 0x156   :  { %177 = vsyncpa [#allocation3], 1 }
 0x157   :  { %178 = vsyncpa [#allocation4], 1 }

</bundles_post_ra>
